<compile_context>
chip_gen: v7x
topology: tpu7x:2x2x1
jax: 0.10.0
libtpu: 0.0.40
codegen_flags: <defaults>
</compile_context>

<pallas_src>
import functools

import jax
import jax.numpy as jnp
from jax import lax
from jax.experimental import pallas as pl
from jax.experimental.pallas import tpu as pltpu


_MIN_PALLAS_ELEMS = 4096  # below this, launch overhead dominates -> pure JAX


def energy_loss_ref(x: jax.Array, temp_factor: float = 1.0) -> jax.Array:
    """Pure-JAX reference (also the fast path for tiny inputs). Any ndim >= 2."""
    e = temp_factor * jax.nn.logsumexp(x.astype(jnp.float32) / temp_factor, axis=1)
    return (1.0 / e.mean()).astype(x.dtype)


def _round_up(v: int, m: int) -> int:
    return ((v + m - 1) // m) * m


def _round_down(v: int, m: int) -> int:
    return max(m, (v // m) * m)


def _vmem_capacity_bytes() -> int:
    """Trace-time VMEM capacity query; conservative fallback if unavailable."""
    try:
        info = pltpu.get_tpu_info()
        for name in ("vmem_capacity_bytes", "vmem_bytes", "vmem_size_bytes"):
            cap = getattr(info, name, None)
            if cap:
                return int(cap)
    except Exception:
        pass
    return 128 * 1024 * 1024


def _select_tiles(B: int, C: int, itemsize: int, hi_bw: bool) -> tuple[int, int]:
    """Pick (block_b, block_c).  Wide class axis first; itemsize-aware bytes."""
    tile_bytes = (16 if hi_bw else 8) * 1024 * 1024
    target_elems = tile_bytes // itemsize
    # Spend the budget on the class axis first: contiguous HBM runs + fewer
    # online-LSE rescale passes.  Keep at least 8 rows per tile.
    cap_c = _round_down(target_elems // 8, 128)
    block_c = C if C <= cap_c else cap_c
    cap_b = _round_down(max(target_elems // block_c, 8), 8)
    block_b = B if B <= cap_b else cap_b
    # v7x megacore: make sure the 'parallel' row axis has >= 2 tiles so both
    # TensorCores get work (no effect on single-TC v5e/v6e, which skip this).
    if hi_bw and B >= 16 and pl.cdiv(B, block_b) < 2:
        block_b = min(block_b, _round_up(pl.cdiv(B, 2), 8))
    return block_b, block_c


def _energy_lse_kernel(x_ref, lse_ref, m_sc, l_sc, *,
                       inv_temp: float, temp: float, C: int, block_c: int):
    """Online logsumexp over the class axis for one (TB, TC) tile.

    grid = (row tiles [parallel], class tiles [arbitrary, innermost])
      x_ref  : (TB, TC) logits tile
      lse_ref: (TB, 1)  per-row energy  temp * logsumexp(x * inv_temp)
      m_sc   : (TB, 1)  running row max     (VMEM scratch, persists over k)
      l_sc   : (TB, 1)  running row exp-sum (VMEM scratch, persists over k)
    """
    k = pl.program_id(1)
    nk = pl.num_programs(1)

    @pl.when(k == 0)
    def _():
        m_sc[...] = jnp.full_like(m_sc, -jnp.inf)
        l_sc[...] = jnp.zeros_like(l_sc)

    # One VALU multiply instead of a per-element divide.
    x = x_ref[...].astype(jnp.float32) * inv_temp                      # (TB, TC)

    def online_update(xv):
        m_prev = m_sc[...]
        m_new = jnp.maximum(m_prev, jnp.max(xv, axis=1, keepdims=True))  # (TB, 1)
        alpha = jnp.exp(m_prev - m_new)
        p = jnp.exp(xv - m_new)
        l_sc[...] = alpha * l_sc[...] + jnp.sum(p, axis=1, keepdims=True)
        m_sc[...] = m_new

    if C % block_c != 0:
        # Only the LAST class block has out-of-range lanes; interior blocks
        # skip the iota/compare/select entirely (review item).
        @pl.when(k < nk - 1)
        def _():
            online_update(x)

        @pl.when(k == nk - 1)
        def _():
            col = lax.broadcasted_iota(jnp.int32, x.shape, 1)
            # Padded lanes -> -inf so they drop out of max and exp-sum.
            online_update(jnp.where(col < (C % block_c), x, -jnp.inf))
    else:
        online_update(x)

    # Finalize once per row-tile; out-of-bounds rows of the last row-tile are
    # not written back by Pallas, and all reductions are strictly row-local,
    # so garbage in padded rows is harmless.
    @pl.when(k == nk - 1)
    def _():
        lse_ref[...] = temp * (m_sc[...] + jnp.log(l_sc[...]))


def energy_loss(x: jax.Array, temp_factor: float = 1.0, *,
                block_b: int | None = None, block_c: int | None = None) -> jax.Array:
    """Pallas implementation of EnergyLoss.forward.

    Matches torch: e = temp * logsumexp(x / temp, dim=1); return 1 / e.mean().
    Accepts any ndim >= 2 (dim 1 is the class axis, as in the PyTorch module).
    """
    if x.ndim < 2:
        raise ValueError(f"energy_loss expects at least 2 dims, got {x.shape}")

    orig_dtype = x.dtype
    if x.ndim > 2:
        # Put the class axis last and flatten every other axis into rows; the
        # mean over per-row energies equals the mean over the reduced tensor.
        x = jnp.moveaxis(x, 1, -1).reshape(-1, x.shape[1])
    B, C = x.shape

    # Tiny inputs: a Pallas launch can't win; use the trivial JAX path.
    if B * C <= _MIN_PALLAS_ELEMS and block_b is None and block_c is None:
        e = temp_factor * jax.nn.logsumexp(
            x.astype(jnp.float32) / temp_factor, axis=1)
        return (1.0 / e.mean()).astype(orig_dtype)

    itemsize = jnp.dtype(x.dtype).itemsize
    vmem_cap = _vmem_capacity_bytes()
    hi_bw = vmem_cap <= 80 * 1024 * 1024            # v7x-like: 64 MiB VMEM, ~3.2 TB/s
    auto_b, auto_c = _select_tiles(B, C, itemsize, hi_bw)
    if block_b is None:
        block_b = auto_b
    if block_c is None:
        block_c = auto_c
    vmem_limit = min((48 if hi_bw else 40) * 1024 * 1024, (vmem_cap * 3) // 4)

    grid = (pl.cdiv(B, block_b), pl.cdiv(C, block_c))

    temp = float(temp_factor)
    kernel = functools.partial(
        _energy_lse_kernel,
        inv_temp=1.0 / temp, temp=temp, C=C, block_c=block_c)

    cost = pl.CostEstimate(
        flops=3 * B * C,                       # max / sub / add per element (approx)
        transcendentals=B * C,                 # one exp per element
        bytes_accessed=B * C * itemsize + B * 4,
    )

    lse = pl.pallas_call(
        kernel,
        out_shape=jax.ShapeDtypeStruct((B, 1), jnp.float32),
        grid_spec=pltpu.PrefetchScalarGridSpec(
            num_scalar_prefetch=0,
            grid=grid,
            in_specs=[pl.BlockSpec((block_b, block_c), lambda i, k: (i, k))],
            out_specs=pl.BlockSpec((block_b, 1), lambda i, k: (i, 0)),
            scratch_shapes=[pltpu.VMEM((block_b, 1), jnp.float32),   # running max
                            pltpu.VMEM((block_b, 1), jnp.float32)],  # running exp-sum
        ),
        compiler_params=pltpu.CompilerParams(
            dimension_semantics=("parallel", "arbitrary"),
            vmem_limit_bytes=int(vmem_limit),
        ),
        cost_estimate=cost,
    )(x)

    # Tiny final reduction over B per-row energies + reciprocal, in plain JAX.
    mean_e = jnp.mean(lse[:, 0])
    return (1.0 / mean_e).astype(orig_dtype)


if __name__ == "__main__":
    key = jax.random.PRNGKey(0)
    k1, k2, k3, k4, k5 = jax.random.split(key, 5)

    # 1) Pallas path, single tile in both dims (auto tile selection).
    x1 = jax.random.normal(k1, (64, 384), dtype=jnp.float32) * 3.0
    o1 = jax.block_until_ready(energy_loss(x1, temp_factor=1.0))
    r1 = energy_loss_ref(x1, 1.0)
    assert jnp.allclose(o1, r1, rtol=1e-4, atol=1e-6), (o1, r1)

    # 2) Pallas path, gridded: online logsumexp over C, masked LAST class block
    #    only, padded tail rows, non-unit temperature. grid = (5, 3).
    x2 = jax.random.normal(k2, (72, 300), dtype=jnp.float32) * 2.0 + 1.0
    o2 = jax.block_until_ready(
        energy_loss(x2, temp_factor=2.5, block_b=16, block_c=128))
    r2 = energy_loss_ref(x2, 2.5)
    assert jnp.allclose(o2, r2, rtol=1e-4, atol=1e-6), (o2, r2)

    # 3) bf16 input: HBM-side dtype kept, f32 accumulation inside the kernel.
    x3 = (jax.random.normal(k3, (72, 300), dtype=jnp.float32) * 2.0).astype(jnp.bfloat16)
    o3 = jax.block_until_ready(
        energy_loss(x3, temp_factor=1.5, block_b=16, block_c=128))
    r3 = energy_loss_ref(x3, 1.5)
    assert jnp.allclose(o3.astype(jnp.float32), r3.astype(jnp.float32),
                        rtol=2e-2, atol=2e-2), (o3, r3)

    # 4) 4-D input (B, C, H, W) as in classification/segmentation use: the
    #    wrapper moves the class axis last and flattens rows.
    x4 = jax.random.normal(k4, (2, 4, 24, 24), dtype=jnp.float32) * 1.5
    o4 = jax.block_until_ready(energy_loss(x4, temp_factor=1.0))
    r4 = energy_loss_ref(x4, 1.0)
    assert jnp.allclose(o4, r4, rtol=1e-4, atol=1e-6), (o4, r4)

    # 5) Tiny input -> pure-JAX fast path (launch overhead dominates).
    x5 = jax.random.normal(k5, (8, 16), dtype=jnp.float32)
    o5 = jax.block_until_ready(energy_loss(x5, temp_factor=1.0))
    r5 = energy_loss_ref(x5, 1.0)
    assert jnp.allclose(o5, r5, rtol=1e-4, atol=1e-6), (o5, r5)

    print("KERNEL_OK")
</pallas_src>

<mosaic_0001>
module attributes {stable_mosaic.version = 11 : i64} {
  func.func @_energy_lse_kernel(%arg0: i32, %arg1: i32, %arg2: memref<64x384xf32, #tpu.memory_space<vmem>>, %arg3: memref<64x1xf32, #tpu.memory_space<vmem>>, %arg4: memref<64x1xf32, #tpu.memory_space<vmem>>, %arg5: memref<64x1xf32, #tpu.memory_space<vmem>>) attributes {dimension_semantics = [#tpu.dimension_semantics<parallel>, #tpu.dimension_semantics<arbitrary>], iteration_bounds = array<i64: 1, 1>, scalar_prefetch = 0 : i64, scratch_operands = 2 : i64, tpu.core_type = #tpu.core_type<tc>, window_params = [{transform_indices = @transform_0, window_bounds = array<i64: 64, 384>}, {transform_indices = @transform_1, window_bounds = array<i64: 64, 1>}]} {
    %c0_i32 = arith.constant 0 : i32
    %0 = arith.cmpi eq, %arg1, %c0_i32 : i32
    %1 = arith.extui %0 : i1 to i32
    %c0_i32_0 = arith.constant 0 : i32
    %2 = arith.cmpi ne, %1, %c0_i32_0 : i32
    scf.if %2 {
      %cst_14 = arith.constant 0xFF800000 : f32
      %25 = vector.broadcast %cst_14 : f32 to vector<64x1xf32>
      %c0_15 = arith.constant 0 : index
      %c0_16 = arith.constant 0 : index
      %26 = vector.load %arg4[%c0_15, %c0_16] : memref<64x1xf32, #tpu.memory_space<vmem>>, vector<64x1xf32>
      tpu.vector_store %arg4[%c0_15, %c0_16], %25 {strides = array<i32>} : memref<64x1xf32, #tpu.memory_space<vmem>>, vector<64x1xf32>,
      %cst_17 = arith.constant 0.000000e+00 : f32
      %27 = vector.broadcast %cst_17 : f32 to vector<64x1xf32>
      %c0_18 = arith.constant 0 : index
      %c0_19 = arith.constant 0 : index
      %28 = vector.load %arg5[%c0_18, %c0_19] : memref<64x1xf32, #tpu.memory_space<vmem>>, vector<64x1xf32>
      tpu.vector_store %arg5[%c0_18, %c0_19], %27 {strides = array<i32>} : memref<64x1xf32, #tpu.memory_space<vmem>>, vector<64x1xf32>,
    } else {
    }
    %c0 = arith.constant 0 : index
    %c0_1 = arith.constant 0 : index
    %3 = vector.load %arg2[%c0, %c0_1] : memref<64x384xf32, #tpu.memory_space<vmem>>, vector<64x384xf32>
    %cst = arith.constant 1.000000e+00 : f32
    %4 = vector.broadcast %cst : f32 to vector<64x384xf32>
    %5 = arith.mulf %3, %4 : vector<64x384xf32>
    %c0_2 = arith.constant 0 : index
    %c0_3 = arith.constant 0 : index
    %6 = vector.load %arg4[%c0_2, %c0_3] : memref<64x1xf32, #tpu.memory_space<vmem>>, vector<64x1xf32>
    %cst_4 = arith.constant dense<0xFF800000> : vector<64xf32>
    %7 = vector.multi_reduction <maximumf>, %5, %cst_4 [1] : vector<64x384xf32> to vector<64xf32>
    %8 = vector.shape_cast %7 : vector<64xf32> to vector<64x1xf32>
    %9 = arith.maximumf %6, %8 : vector<64x1xf32>
    %10 = arith.subf %6, %9 : vector<64x1xf32>
    %11 = math.exp %10 : vector<64x1xf32>
    %12 = vector.broadcast %9 : vector<64x1xf32> to vector<64x384xf32>
    %13 = arith.subf %5, %12 : vector<64x384xf32>
    %14 = math.exp %13 : vector<64x384xf32>
    %c0_5 = arith.constant 0 : index
    %c0_6 = arith.constant 0 : index
    %15 = vector.load %arg5[%c0_5, %c0_6] : memref<64x1xf32, #tpu.memory_space<vmem>>, vector<64x1xf32>
    %16 = arith.mulf %11, %15 : vector<64x1xf32>
    %cst_7 = arith.constant dense<0.000000e+00> : vector<64xf32>
    %17 = vector.multi_reduction <add>, %14, %cst_7 [1] : vector<64x384xf32> to vector<64xf32>
    %18 = vector.shape_cast %17 : vector<64xf32> to vector<64x1xf32>
    %19 = arith.addf %16, %18 : vector<64x1xf32>
    %c0_8 = arith.constant 0 : index
    %c0_9 = arith.constant 0 : index
    %20 = vector.load %arg5[%c0_8, %c0_9] : memref<64x1xf32, #tpu.memory_space<vmem>>, vector<64x1xf32>
    tpu.vector_store %arg5[%c0_8, %c0_9], %19 {strides = array<i32>} : memref<64x1xf32, #tpu.memory_space<vmem>>, vector<64x1xf32>,
    %c0_10 = arith.constant 0 : index
    %c0_11 = arith.constant 0 : index
    %21 = vector.load %arg4[%c0_10, %c0_11] : memref<64x1xf32, #tpu.memory_space<vmem>>, vector<64x1xf32>
    tpu.vector_store %arg4[%c0_10, %c0_11], %9 {strides = array<i32>} : memref<64x1xf32, #tpu.memory_space<vmem>>, vector<64x1xf32>,
    %c0_i32_12 = arith.constant 0 : i32
    %22 = arith.cmpi eq, %arg1, %c0_i32_12 : i32
    %23 = arith.extui %22 : i1 to i32
    %c0_i32_13 = arith.constant 0 : i32
    %24 = arith.cmpi ne, %23, %c0_i32_13 : i32
    scf.if %24 {
      %c0_14 = arith.constant 0 : index
      %c0_15 = arith.constant 0 : index
      %25 = vector.load %arg4[%c0_14, %c0_15] : memref<64x1xf32, #tpu.memory_space<vmem>>, vector<64x1xf32>
      %c0_16 = arith.constant 0 : index
      %c0_17 = arith.constant 0 : index
      %26 = vector.load %arg5[%c0_16, %c0_17] : memref<64x1xf32, #tpu.memory_space<vmem>>, vector<64x1xf32>
      %27 = math.log %26 : vector<64x1xf32>
      %28 = arith.addf %25, %27 : vector<64x1xf32>
      %cst_18 = arith.constant 1.000000e+00 : f32
      %29 = vector.broadcast %cst_18 : f32 to vector<64x1xf32>
      %30 = arith.mulf %29, %28 : vector<64x1xf32>
      %c0_19 = arith.constant 0 : index
      %c0_20 = arith.constant 0 : index
      %31 = vector.load %arg3[%c0_19, %c0_20] : memref<64x1xf32, #tpu.memory_space<vmem>>, vector<64x1xf32>
      tpu.vector_store %arg3[%c0_19, %c0_20], %30 {strides = array<i32>} : memref<64x1xf32, #tpu.memory_space<vmem>>, vector<64x1xf32>,
    } else {
    }
    return
  }
  func.func @transform_0(%arg0: i32, %arg1: i32) -> (i32, i32) {
    %c0_i32 = arith.constant 0 : i32
    return %arg0, %arg1 : i32, i32
  }
  func.func @transform_1(%arg0: i32, %arg1: i32) -> (i32, i32) {
    %c0_i32 = arith.constant 0 : i32
    %c0_i32_0 = arith.constant 0 : i32
    return %arg0, %c0_i32 : i32, i32
  }
}

</mosaic_0001>

<bundles_post_ra>
// kernel: tpu_custom_call.1
= control target key start
LH: loop header
LB: loop body
LE: loop exit
PB: predicated region body
PF: predicated region fallthrough
CT: control target
= control target key end

     0   :  { %6 = vsyncpa [#allocation5], 0  ;;  %s492_s6 = smov [#allocation4]   ;;  %s776_s0 = inlined_call_operand.hbm [shape: f32[64,384], index: 0, kind: input, shape index: {}]   ;;  %s777_s1 = inlined_call_operand.vmem [shape: f32[64,1], index: 1, kind: output, shape index: {}]  }
   0x1   :  { %s12_s7 = sshll.u32 %s492_s6, 4  ;;  %s468_s10 = scalar_lea.hbm %s776_s0, 3072  ;;  %s13_s7 = int_to_ptr.vmem [resolvable:$true] %s12_s7 }
   0x2   :  { %p469_p0 = scmp.ne.s32.totalorder %s776_s0, %s468_s10  ;;  %p472_p1 = scmp.lt.u32.totalorder %s468_s10, %s776_s0 }
   0x4   :  { %p474_p2 = pnand %p472_p1, %p469_p0 }
   0x6   :  { %477 = shalt.err (!%p474_p2)
}
   0x7   :  { %s478_s15 = scalar_lea.vmem %s13_s7, 3072  ;;  %p483_p4 = scmp.lt.s32.totalorder %s13_s7, %s13_s7 }
   0x8   :  { %p479_p3 = scmp.ne.s32.totalorder %s13_s7, %s478_s15  ;;  %p484_p5 = scmp.lt.s32.totalorder %s478_s15, %s478_s15 }
   0xa   :  { %p485_p6 = por %p484_p5, %p483_p4 }
   0xc   :  { %p486_p7 = pnand %p485_p6, %p479_p3 }
   0xe   :  { %489 = shalt.err (!%p486_p7)
}
   0xf   :  { %s493_s16 = smov 384   ;;  %s494_s17 = smov 24  }
  0x10   :  { %18 = dma.hbm_to_vmem [thread:$0]  %s776_s0, 3072, %s13_s7, [#allocation5], %s493_s16, %s493_s16, %s494_s17  }
  0x11   :  { %490 = dma.done.wait [#allocation5], 3072  }
  0x12   :  { %491 = vsyncadd [#allocation5], 4294964224  ;;  %vm26_vm0 = vcmask 7168   ;;  %v495_v0 = vmov -inf   ;;  %v528_v1 = vld [vmem:[#allocation4] sm:$0xff]  ;;  %v530_v2 = vld [vmem:[#allocation4 + $0x8] sm:$0xff] }
  0x13   :  { %27 = vst.msk [vmem:[#allocation2] sm:$0xff] %vm26_vm0, %v495_v0  ;;  %28 = vst.msk [vmem:[#allocation2 + $0x8] sm:$0xff] %vm26_vm0, %v495_v0  ;;  %v532_v3 = vld [vmem:[#allocation4 + $0x10] sm:$0xff]  ;;  %v75_v4 = vmax.f32 %v528_v1, %v530_v2  ;;  %v536_v5 = vld [vmem:[#allocation4 + $0x18] sm:$0xff]  ;;  %v496_v41 = vmov 0   ;;  %v497_v42 = vmov 0.0  }
  0x14   :  { %29 = vst.msk [vmem:[#allocation2 + $0x10] sm:$0xff] %vm26_vm0, %v495_v0  ;;  %30 = vst.msk [vmem:[#allocation2 + $0x18] sm:$0xff] %vm26_vm0, %v495_v0  ;;  %v538_v6 = vld [vmem:[#allocation4 + $0x20] sm:$0xff]  ;;  %v540_v7 = vld [vmem:[#allocation4 + $0x28] sm:$0xff]  ;;  %386 = vset.pattern.permute.xlu0 %v496_v41  ;;  %387 = vset.pattern.permute.xlu1 %v496_v41 }
  0x15   :  { %31 = vst.msk [vmem:[#allocation2 + $0x20] sm:$0xff] %vm26_vm0, %v495_v0  ;;  %32 = vst.msk [vmem:[#allocation2 + $0x28] sm:$0xff] %vm26_vm0, %v495_v0  ;;  %v79_v8 = vmax.f32 %v536_v5, %v538_v6  ;;  %v544_v9 = vld [vmem:[#allocation4 + $0x30] sm:$0xff]  ;;  %v546_v10 = vld [vmem:[#allocation4 + $0x38] sm:$0xff]  ;;  %v76_v12 = vmax.f32 %v75_v4, %v532_v3 }
  0x16   :  { %33 = vst.msk [vmem:[#allocation2 + $0x30] sm:$0xff] %vm26_vm0, %v495_v0  ;;  %34 = vst.msk [vmem:[#allocation2 + $0x38] sm:$0xff] %vm26_vm0, %v495_v0  ;;  %v548_v11 = vld [vmem:[#allocation4 + $0x40] sm:$0xff]  ;;  %v83_v13 = vmax.f32 %v544_v9, %v546_v10  ;;  %v553_v14 = vld [vmem:[#allocation4 + $0x48] sm:$0xff] }
  0x17   :  { %v555_v15 = vld [vmem:[#allocation4 + $0x50] sm:$0xff]  ;;  %v557_v16 = vld [vmem:[#allocation4 + $0x58] sm:$0xff]  ;;  %v561_v18 = vld [vmem:[#allocation4 + $0x60] sm:$0xff]  ;;  %77 = vmax.xlane.f32.xlu0 %v76_v12  ;;  %v80_v20 = vmax.f32 %v79_v8, %v540_v7  ;;  %35 = vst.msk [vmem:[#allocation3] sm:$0xff] %vm26_vm0, %v497_v42 }
  0x18   :  { %v87_v17 = vmax.f32 %v553_v14, %v555_v15  ;;  %v563_v19 = vld [vmem:[#allocation4 + $0x68] sm:$0xff]  ;;  %v84_v21 = vmax.f32 %v83_v13, %v548_v11  ;;  %v569_v23 = vld [vmem:[#allocation4 + $0x78] sm:$0xff]  ;;  %v571_v24 = vld [vmem:[#allocation4 + $0x80] sm:$0xff]  ;;  %36 = vst.msk [vmem:[#allocation3 + $0x8] sm:$0xff] %vm26_vm0, %v497_v42 }
  0x19   :  { %v91_v22 = vmax.f32 %v561_v18, %v563_v19  ;;  %v573_v25 = vld [vmem:[#allocation4 + $0x70] sm:$0xff]  ;;  %v577_v27 = vld [vmem:[#allocation4 + $0x98] sm:$0xff]  ;;  %v95_v29 = vmax.f32 %v569_v23, %v571_v24  ;;  %v582_v30 = vld [vmem:[#allocation4 + $0x88] sm:$0xff]  ;;  %37 = vst.msk [vmem:[#allocation3 + $0x10] sm:$0xff] %vm26_vm0, %v497_v42 }
  0x1a   :  { %v575_v26 = vld [vmem:[#allocation4 + $0x90] sm:$0xff]  ;;  %85 = vmax.xlane.f32.xlu1 %v84_v21  ;;  %v88_v28 = vmax.f32 %v87_v17, %v557_v16  ;;  %v584_v31 = vld [vmem:[#allocation4 + $0xa8] sm:$0xff]  ;;  %v591_v35 = vld [vmem:[#allocation4 + $0xa0] sm:$0xff]  ;;  %38 = vst.msk [vmem:[#allocation3 + $0x18] sm:$0xff] %vm26_vm0, %v497_v42 }
  0x1b   :  { %v586_v32 = vld [vmem:[#allocation4 + $0xb0] sm:$0xff]  ;;  %81 = vmax.xlane.f32.xlu0 %v80_v20  ;;  %v92_v33 = vmax.f32 %v91_v22, %v573_v25  ;;  %v99_v34 = vmax.f32 %v575_v26, %v577_v27  ;;  %v96_v36 = vmax.f32 %v95_v29, %v582_v30  ;;  %v596_v38 = vld [vmem:[#allocation4 + $0xb8] sm:$0xff]  ;;  %39 = vst.msk [vmem:[#allocation3 + $0x20] sm:$0xff] %vm26_vm0, %v497_v42  ;;  %40 = vst.msk [vmem:[#allocation3 + $0x28] sm:$0xff] %vm26_vm0, %v497_v42 }
  0x1c   :  { %v103_v37 = vmax.f32 %v584_v31, %v586_v32  ;;  %41 = vst.msk [vmem:[#allocation3 + $0x30] sm:$0xff] %vm26_vm0, %v497_v42  ;;  %42 = vst.msk [vmem:[#allocation3 + $0x38] sm:$0xff] %vm26_vm0, %v497_v42  ;;  %v608_v43 = vld [vmem:[#allocation2] sm:$0xff]  ;;  %v610_v45 = vld [vmem:[#allocation2 + $0x10] sm:$0xff] }
  0x1d   :  { %v100_v39 = vmax.f32 %v99_v34, %v591_v35  ;;  %v615_v47 = vld [vmem:[#allocation2 + $0x8] sm:$0xff]  ;;  %v625_v52 = vld [vmem:[#allocation2 + $0x18] sm:$0xff]  ;;  %v634_v56 = vld [vmem:[#allocation2 + $0x20] sm:$0xff] }
  0x1e   :  { %89 = vmax.xlane.f32.xlu1 %v88_v28  ;;  %v104_v40 = vmax.f32 %v103_v37, %v596_v38  ;;  %v644_v60 = vld [vmem:[#allocation2 + $0x28] sm:$0xff]  ;;  %v653_v0 = vld [vmem:[#allocation2 + $0x30] sm:$0xff]  ;;  %v663_v13 = vld [vmem:[#allocation2 + $0x38] sm:$0xff] }
  0x1f   :  { %93 = vmax.xlane.f32.xlu0 %v92_v33 }
  0x22   :  { %97 = vmax.xlane.f32.xlu1 %v96_v36 }
  0x23   :  { %101 = vmax.xlane.f32.xlu0 %v100_v39 }
  0x26   :  { %105 = vmax.xlane.f32.xlu1 %v104_v40 }
  0xa4   :  { %v78_v44 = vpop.xlane.xlu0 %77 }
  0xa5   :  { %v613_v46 = vmax.f32 %v608_v43, %v78_v44 }
  0xa7   :  { %v86_v48 = vpop.xlane.xlu1 %85  ;;  %v115_v49 = vsub.f32 %v608_v43, %v613_v46  ;;  %316 = vst.msk [vmem:[#allocation2] sm:$0xff] %vm26_vm0, %v613_v46  ;;  %141 = vperm.xlu0 %386, %v613_v46  }
  0xa8   :  { %v623_v50 = vmax.f32 %v610_v45, %v86_v48  ;;  %v82_v51 = vpop.xlane.xlu0 %81 }
  0xa9   :  { %v628_v53 = vmax.f32 %v615_v47, %v82_v51 }
  0xaa   :  { %v117_v54 = vsub.f32 %v610_v45, %v623_v50  ;;  %318 = vst.msk [vmem:[#allocation2 + $0x10] sm:$0xff] %vm26_vm0, %v623_v50 }
  0xab   :  { %v90_v55 = vpop.xlane.xlu1 %89  ;;  %v116_v57 = vsub.f32 %v615_v47, %v628_v53  ;;  %317 = vst.msk [vmem:[#allocation2 + $0x8] sm:$0xff] %vm26_vm0, %v628_v53  ;;  %146 = vperm.xlu1 %387, %v628_v53   ;;  %v252_v53 = vld [vmem:[#allocation3 + $0x8] sm:$0xff] }
  0xac   :  { %v642_v58 = vmax.f32 %v625_v52, %v90_v55  ;;  %v94_v59 = vpop.xlane.xlu0 %93 }
  0xad   :  { %v651_v62 = vmax.f32 %v634_v56, %v94_v59 }
  0xae   :  { %v118_v61 = vsub.f32 %v625_v52, %v642_v58  ;;  %319 = vst.msk [vmem:[#allocation2 + $0x18] sm:$0xff] %vm26_vm0, %v642_v58 }
  0xaf   :  { %v98_v63 = vpop.xlane.xlu1 %97  ;;  %151 = vperm.xlu1 %387, %v623_v50   ;;  %v119_v4 = vsub.f32 %v634_v56, %v651_v62  ;;  %320 = vst.msk [vmem:[#allocation2 + $0x20] sm:$0xff] %vm26_vm0, %v651_v62 }
  0xb0   :  { %v661_v8 = vmax.f32 %v644_v60, %v98_v63  ;;  %v102_v12 = vpop.xlane.xlu0 %101 }
  0xb1   :  { %v670_v20 = vmax.f32 %v653_v0, %v102_v12  ;;  %v131_v43 = vmul.f32 1.442695, %v119_v4 }
  0xb2   :  { %v120_v17 = vsub.f32 %v644_v60, %v661_v8  ;;  %321 = vst.msk [vmem:[#allocation2 + $0x28] sm:$0xff] %vm26_vm0, %v661_v8  ;;  %v254_v60 = vld [vmem:[#allocation3 + $0x18] sm:$0xff] }
  0xb3   :  { %v106_v21 = vpop.xlane.xlu1 %105  ;;  %156 = vperm.xlu1 %387, %v642_v58   ;;  %v121_v22 = vsub.f32 %v653_v0, %v670_v20  ;;  %322 = vst.msk [vmem:[#allocation2 + $0x30] sm:$0xff] %vm26_vm0, %v670_v20  ;;  %v253_v58 = vld [vmem:[#allocation3 + $0x10] sm:$0xff] }
  0xb4   :  { %v678_v28 = vmax.f32 %v663_v13, %v106_v21  ;;  %v133_v45 = vmul.f32 1.442695, %v120_v17 }
  0xb5   :  { %v135_v56 = vmul.f32 1.442695, %v121_v22 }
  0xb6   :  { %v122_v29 = vsub.f32 %v663_v13, %v678_v28  ;;  %323 = vst.msk [vmem:[#allocation2 + $0x38] sm:$0xff] %vm26_vm0, %v678_v28  ;;  %v256_v13 = vld [vmem:[#allocation3 + $0x28] sm:$0xff] }
  0xb7   :  { %161 = vperm.xlu1 %387, %v651_v62  }
  0xbb   :  { %166 = vperm.xlu1 %387, %v661_v8   ;;  %v137_v8 = vmul.f32 1.442695, %v122_v29 }
  0xbf   :  { %171 = vperm.xlu1 %387, %v670_v20   ;;  %v255_v20 = vld [vmem:[#allocation3 + $0x20] sm:$0xff] }
  0xc3   :  { %176 = vperm.xlu1 %387, %v678_v28  }
 0x126   :  { %v142_v33 = vpop.permute.xlu0 %141 }
 0x127   :  { %v179_v34 = vsub.f32 %v528_v1, %v142_v33  ;;  %v180_v36 = vsub.f32 %v530_v2, %v142_v33  ;;  %v181_v37 = vsub.f32 %v532_v3, %v142_v33 }
 0x129   :  { %v203_v39 = vmul.f32 1.442695, %v179_v34  ;;  %v205_v40 = vmul.f32 1.442695, %v180_v36  ;;  %v207_v41 = vmul.f32 1.442695, %v181_v37 }
 0x12a   :  { %v147_v42 = vpop.permute.xlu1 %146 }
 0x12b   :  { %388 = vpow2.f32 %v203_v39  ;;  %v182_v44 = vsub.f32 %v536_v5, %v147_v42  ;;  %v183_v48 = vsub.f32 %v538_v6, %v147_v42  ;;  %v184_v51 = vsub.f32 %v540_v7, %v147_v42 }
 0x12c   :  { %390 = vpow2.f32 %v205_v40 }
 0x12d   :  { %v209_v55 = vmul.f32 1.442695, %v182_v44  ;;  %v211_v59 = vmul.f32 1.442695, %v183_v48  ;;  %392 = vpow2.f32 %v207_v41  ;;  %v213_v1 = vmul.f32 1.442695, %v184_v51 }
 0x12e   :  { %v152_v63 = vpop.permute.xlu1 %151 }
 0x12f   :  { %394 = vpow2.f32 %v209_v55  ;;  %v185_v2 = vsub.f32 %v544_v9, %v152_v63  ;;  %v186_v3 = vsub.f32 %v546_v10, %v152_v63  ;;  %v187_v12 = vsub.f32 %v548_v11, %v152_v63 }
 0x130   :  { %396 = vpow2.f32 %v211_v59 }
 0x131   :  { %v215_v21 = vmul.f32 1.442695, %v185_v2  ;;  %v217_v5 = vmul.f32 1.442695, %v186_v3  ;;  %398 = vpow2.f32 %v213_v1  ;;  %v219_v6 = vmul.f32 1.442695, %v187_v12 }
 0x132   :  { %v157_v33 = vpop.permute.xlu1 %156 }
 0x133   :  { %400 = vpow2.f32 %v215_v21  ;;  %v188_v7 = vsub.f32 %v553_v14, %v157_v33  ;;  %v189_v34 = vsub.f32 %v555_v15, %v157_v33  ;;  %v190_v36 = vsub.f32 %v557_v16, %v157_v33 }
 0x134   :  { %402 = vpow2.f32 %v217_v5 }
 0x135   :  { %v389_v37 = vpop.eup %388  ;;  %v221_v9 = vmul.f32 1.442695, %v188_v7  ;;  %v223_v39 = vmul.f32 1.442695, %v189_v34  ;;  %404 = vpow2.f32 %v219_v6  ;;  %v225_v11 = vmul.f32 1.442695, %v190_v36 }
 0x136   :  { %v391_v10 = vpop.eup %390  ;;  %v162_v40 = vpop.permute.xlu1 %161 }
 0x137   :  { %406 = vpow2.f32 %v221_v9  ;;  %v191_v41 = vsub.f32 %v561_v18, %v162_v40  ;;  %v192_v42 = vsub.f32 %v563_v19, %v162_v40  ;;  %v193_v44 = vsub.f32 %v573_v25, %v162_v40  ;;  %v393_v14 = vpop.eup %392 }
 0x138   :  { %408 = vpow2.f32 %v223_v39  ;;  %v267_v15 = vadd.f32 %v391_v10, %v389_v37 }
 0x139   :  { %v395_v48 = vpop.eup %394  ;;  %v227_v16 = vmul.f32 1.442695, %v191_v41  ;;  %v229_v51 = vmul.f32 1.442695, %v192_v42  ;;  %410 = vpow2.f32 %v225_v11  ;;  %v231_v59 = vmul.f32 1.442695, %v193_v44 }
 0x13a   :  { %v397_v55 = vpop.eup %396  ;;  %v167_v1 = vpop.permute.xlu1 %166  ;;  %v268_v63 = vadd.f32 %v393_v14, %v267_v15 }
 0x13b   :  { %412 = vpow2.f32 %v227_v16  ;;  %v194_v2 = vsub.f32 %v569_v23, %v167_v1  ;;  %v195_v18 = vsub.f32 %v571_v24, %v167_v1  ;;  %v196_v19 = vsub.f32 %v582_v30, %v167_v1  ;;  %v399_v3 = vpop.eup %398 }
 0x13c   :  { %414 = vpow2.f32 %v229_v51  ;;  %269 = vadd.xlane.f32.xlu1 %v268_v63  ;;  %v271_v25 = vadd.f32 %v397_v55, %v395_v48 }
 0x13d   :  { %v401_v12 = vpop.eup %400  ;;  %v233_v21 = vmul.f32 1.442695, %v194_v2  ;;  %v235_v5 = vmul.f32 1.442695, %v195_v18  ;;  %416 = vpow2.f32 %v231_v59  ;;  %v237_v33 = vmul.f32 1.442695, %v196_v19 }
 0x13e   :  { %v403_v6 = vpop.eup %402  ;;  %v172_v7 = vpop.permute.xlu1 %171  ;;  %v272_v34 = vadd.f32 %v399_v3, %v271_v25 }
 0x13f   :  { %418 = vpow2.f32 %v233_v21  ;;  %v197_v36 = vsub.f32 %v575_v26, %v172_v7  ;;  %v198_v23 = vsub.f32 %v577_v27, %v172_v7  ;;  %v199_v24 = vsub.f32 %v591_v35, %v172_v7  ;;  %v405_v30 = vpop.eup %404 }
 0x140   :  { %420 = vpow2.f32 %v235_v5  ;;  %273 = vadd.xlane.f32.xlu0 %v272_v34  ;;  %v275_v37 = vadd.f32 %v403_v6, %v401_v12 }
 0x141   :  { %v407_v9 = vpop.eup %406  ;;  %v239_v39 = vmul.f32 1.442695, %v197_v36  ;;  %v241_v10 = vmul.f32 1.442695, %v198_v23  ;;  %422 = vpow2.f32 %v237_v33  ;;  %v243_v40 = vmul.f32 1.442695, %v199_v24 }
 0x142   :  { %v409_v11 = vpop.eup %408  ;;  %v177_v41 = vpop.permute.xlu1 %176  ;;  %v276_v42 = vadd.f32 %v405_v30, %v275_v37  ;;  %v123_v23 = vmul.f32 1.442695, %v115_v49  ;;  %v125_v24 = vmul.f32 1.442695, %v116_v57  ;;  %v127_v30 = vmul.f32 1.442695, %v117_v54 }
 0x143   :  { %424 = vpow2.f32 %v239_v39  ;;  %v200_v44 = vsub.f32 %v584_v31, %v177_v41  ;;  %v201_v26 = vsub.f32 %v586_v32, %v177_v41  ;;  %v202_v27 = vsub.f32 %v596_v38, %v177_v41  ;;  %v411_v35 = vpop.eup %410  ;;  %v251_v39 = vld [vmem:[#allocation3] sm:$0xff] }
 0x144   :  { %426 = vpow2.f32 %v241_v10  ;;  %277 = vadd.xlane.f32.xlu0 %v276_v42  ;;  %v279_v14 = vadd.f32 %v409_v11, %v407_v9  ;;  %v129_v37 = vmul.f32 1.442695, %v118_v61 }
 0x145   :  { %v413_v15 = vpop.eup %412  ;;  %v245_v48 = vmul.f32 1.442695, %v200_v44  ;;  %v247_v16 = vmul.f32 1.442695, %v201_v26  ;;  %428 = vpow2.f32 %v243_v40  ;;  %v249_v55 = vmul.f32 1.442695, %v202_v27 }
 0x146   :  { %v415_v51 = vpop.eup %414  ;;  %v280_v59 = vadd.f32 %v411_v35, %v279_v14 }
 0x147   :  { %430 = vpow2.f32 %v245_v48  ;;  %v283_v1 = vadd.f32 %v415_v51, %v413_v15  ;;  %v417_v63 = vpop.eup %416  ;;  %v257_v48 = vld [vmem:[#allocation3 + $0x30] sm:$0xff] }
 0x148   :  { %432 = vpow2.f32 %v247_v16  ;;  %281 = vadd.xlane.f32.xlu1 %v280_v59 }
 0x149   :  { %v419_v31 = vpop.eup %418  ;;  %v284_v32 = vadd.f32 %v417_v63, %v283_v1  ;;  %434 = vpow2.f32 %v249_v55 }
 0x14a   :  { %v421_v2 = vpop.eup %420  ;;  %436 = vpow2.f32 %v123_v23  ;;  %v329_v23 = vld [vmem:[#allocation2 + $0x10] sm:$0xff] }
 0x14b   :  { %285 = vadd.xlane.f32.xlu0 %v284_v32  ;;  %v287_v38 = vadd.f32 %v421_v2, %v419_v31  ;;  %v423_v18 = vpop.eup %422  ;;  %438 = vpow2.f32 %v125_v24  ;;  %v327_v31 = vld [vmem:[#allocation2] sm:$0xff]  ;;  %v258_v2 = vld [vmem:[#allocation3 + $0x38] sm:$0xff] }
 0x14c   :  { %440 = vpow2.f32 %v127_v30 }
 0x14d   :  { %v425_v19 = vpop.eup %424  ;;  %v288_v3 = vadd.f32 %v423_v18, %v287_v38  ;;  %442 = vpow2.f32 %v129_v37 }
 0x14e   :  { %v427_v25 = vpop.eup %426  ;;  %444 = vpow2.f32 %v131_v43 }
 0x14f   :  { %289 = vadd.xlane.f32.xlu1 %v288_v3  ;;  %v291_v12 = vadd.f32 %v427_v25, %v425_v19  ;;  %v429_v21 = vpop.eup %428  ;;  %446 = vpow2.f32 %v133_v45 }
 0x150   :  { %448 = vpow2.f32 %v135_v56 }
 0x151   :  { %v431_v5 = vpop.eup %430  ;;  %v292_v6 = vadd.f32 %v429_v21, %v291_v12  ;;  %v328_v21 = vld [vmem:[#allocation2 + $0x8] sm:$0xff] }
 0x152   :  { %v433_v33 = vpop.eup %432 }
 0x153   :  { %293 = vadd.xlane.f32.xlu0 %v292_v6  ;;  %v295_v7 = vadd.f32 %v433_v33, %v431_v5  ;;  %v435_v34 = vpop.eup %434 }
 0x154   :  { %v437_v9 = vpop.eup %436 }
 0x155   :  { %v296_v36 = vadd.f32 %v435_v34, %v295_v7  ;;  %v259_v46 = vmul.f32 %v437_v9, %v251_v39  ;;  %v439_v47 = vpop.eup %438  ;;  %v330_v39 = vld [vmem:[#allocation2 + $0x18] sm:$0xff] }
 0x156   :  { %v260_v52 = vmul.f32 %v439_v47, %v252_v53  ;;  %v441_v54 = vpop.eup %440  ;;  %v331_v53 = vld [vmem:[#allocation2 + $0x20] sm:$0xff] }
 0x157   :  { %297 = vadd.xlane.f32.xlu1 %v296_v36  ;;  %v261_v62 = vmul.f32 %v441_v54, %v253_v58  ;;  %v443_v4 = vpop.eup %442  ;;  %v332_v54 = vld [vmem:[#allocation2 + $0x28] sm:$0xff] }
 0x158   :  { %v445_v40 = vpop.eup %444  ;;  %v262_v0 = vmul.f32 %v443_v4, %v254_v60  ;;  %v334_v60 = vld [vmem:[#allocation2 + $0x38] sm:$0xff] }
 0x159   :  { %v263_v44 = vmul.f32 %v445_v40, %v255_v20  ;;  %v447_v26 = vpop.eup %446 }
 0x15a   :  { %v264_v35 = vmul.f32 %v447_v26, %v256_v13  ;;  %v449_v14 = vpop.eup %448 }
 0x15b   :  { %v265_v1 = vmul.f32 %v449_v14, %v257_v48 }
 0x1c9   :  { %v270_v49 = vpop.xlane.xlu1 %269 }
 0x1ca   :  { %v299_v50 = vadd.f32 %v270_v49, %v259_v46 }
 0x1cc   :  { %308 = vst.msk [vmem:[#allocation3] sm:$0xff] %vm26_vm0, %v299_v50 }
 0x1cd   :  { %v274_v57 = vpop.xlane.xlu0 %273 }
 0x1ce   :  { %v300_v61 = vadd.f32 %v274_v57, %v260_v52 }
 0x1d0   :  { %309 = vst.msk [vmem:[#allocation3 + $0x8] sm:$0xff] %vm26_vm0, %v300_v61  ;;  %v333_v61 = vld [vmem:[#allocation2 + $0x30] sm:$0xff] }
 0x1d1   :  { %v278_v10 = vpop.xlane.xlu0 %277 }
 0x1d2   :  { %v301_v17 = vadd.f32 %v278_v10, %v261_v62 }
 0x1d3   :  { %v335_v11 = vld [vmem:[#allocation3] sm:$0xff] }
 0x1d4   :  { %450 = vlog2.f32 %v335_v11  ;;  %310 = vst.msk [vmem:[#allocation3 + $0x10] sm:$0xff] %vm26_vm0, %v301_v17 }
 0x1d5   :  { %v282_v22 = vpop.xlane.xlu1 %281  ;;  %452 = vpow2.f32 %v137_v8 }
 0x1d6   :  { %v302_v41 = vadd.f32 %v282_v22, %v262_v0 }
 0x1d7   :  { %v336_v42 = vld [vmem:[#allocation3 + $0x8] sm:$0xff] }
 0x1d8   :  { %454 = vlog2.f32 %v336_v42  ;;  %311 = vst.msk [vmem:[#allocation3 + $0x18] sm:$0xff] %vm26_vm0, %v302_v41  ;;  %v286_v27 = vpop.xlane.xlu0 %285 }
 0x1d9   :  { %v303_v28 = vadd.f32 %v286_v27, %v263_v44 }
 0x1db   :  { %v337_v29 = vld [vmem:[#allocation3 + $0x10] sm:$0xff]  ;;  %312 = vst.msk [vmem:[#allocation3 + $0x20] sm:$0xff] %vm26_vm0, %v303_v28 }
 0x1dc   :  { %456 = vlog2.f32 %v337_v29  ;;  %v290_v15 = vpop.xlane.xlu1 %289 }
 0x1dd   :  { %v304_v16 = vadd.f32 %v290_v15, %v264_v35 }
 0x1de   :  { %v451_v51 = vpop.eup %450 }
 0x1df   :  { %v344_v55 = vmul.f32 0.6931472, %v451_v51  ;;  %v338_v59 = vld [vmem:[#allocation3 + $0x18] sm:$0xff]  ;;  %313 = vst.msk [vmem:[#allocation3 + $0x28] sm:$0xff] %vm26_vm0, %v304_v16  ;;  %v453_v63 = vpop.eup %452 }
 0x1e0   :  { %458 = vlog2.f32 %v338_v59  ;;  %v294_v32 = vpop.xlane.xlu0 %293  ;;  %v266_v12 = vmul.f32 %v453_v63, %v258_v2 }
 0x1e1   :  { %v359_v38 = vadd.f32 %v344_v55, %v327_v31  ;;  %v305_v18 = vadd.f32 %v294_v32, %v265_v1 }
 0x1e2   :  { %v455_v19 = vpop.eup %454  ;;  %v339_v3 = vld [vmem:[#allocation3 + $0x20] sm:$0xff] }
 0x1e3   :  { %367 = vst.msk [vmem:[%s777_s1] sm:$0xff] %vm26_vm0, %v359_v38  ;;  %v346_v25 = vmul.f32 0.6931472, %v455_v19  ;;  %460 = vlog2.f32 %v339_v3  ;;  %314 = vst.msk [vmem:[#allocation3 + $0x30] sm:$0xff] %vm26_vm0, %v305_v18 }
 0x1e4   :  { %v298_v5 = vpop.xlane.xlu1 %297 }
 0x1e5   :  { %v360_v6 = vadd.f32 %v346_v25, %v328_v21  ;;  %v306_v33 = vadd.f32 %v298_v5, %v266_v12 }
 0x1e6   :  { %v457_v7 = vpop.eup %456  ;;  %v340_v34 = vld [vmem:[#allocation3 + $0x28] sm:$0xff] }
 0x1e7   :  { %368 = vst.msk [vmem:[%s777_s1 + $0x8] sm:$0xff] %vm26_vm0, %v360_v6  ;;  %v348_v36 = vmul.f32 0.6931472, %v457_v7  ;;  %462 = vlog2.f32 %v340_v34  ;;  %315 = vst.msk [vmem:[#allocation3 + $0x38] sm:$0xff] %vm26_vm0, %v306_v33 }
 0x1e9   :  { %v361_v24 = vadd.f32 %v348_v36, %v329_v23 }
 0x1ea   :  { %v459_v30 = vpop.eup %458  ;;  %v341_v37 = vld [vmem:[#allocation3 + $0x30] sm:$0xff] }
 0x1eb   :  { %369 = vst.msk [vmem:[%s777_s1 + $0x10] sm:$0xff] %vm26_vm0, %v361_v24  ;;  %v350_v9 = vmul.f32 0.6931472, %v459_v30  ;;  %464 = vlog2.f32 %v341_v37 }
 0x1ed   :  { %v461_v43 = vpop.eup %460  ;;  %v362_v46 = vadd.f32 %v350_v9, %v330_v39 }
 0x1ee   :  { %v352_v47 = vmul.f32 0.6931472, %v461_v43  ;;  %v342_v49 = vld [vmem:[#allocation3 + $0x38] sm:$0xff] }
 0x1ef   :  { %370 = vst.msk [vmem:[%s777_s1 + $0x18] sm:$0xff] %vm26_vm0, %v362_v46  ;;  %466 = vlog2.f32 %v342_v49 }
 0x1f0   :  { %v363_v45 = vadd.f32 %v352_v47, %v331_v53 }
 0x1f1   :  { %v463_v50 = vpop.eup %462 }
 0x1f2   :  { %371 = vst.msk [vmem:[%s777_s1 + $0x20] sm:$0xff] %vm26_vm0, %v363_v45  ;;  %v354_v52 = vmul.f32 0.6931472, %v463_v50 }
 0x1f4   :  { %v364_v57 = vadd.f32 %v354_v52, %v332_v54 }
 0x1f5   :  { %v465_v58 = vpop.eup %464 }
 0x1f6   :  { %372 = vst.msk [vmem:[%s777_s1 + $0x28] sm:$0xff] %vm26_vm0, %v364_v57  ;;  %v356_v56 = vmul.f32 0.6931472, %v465_v58 }
 0x1f8   :  { %v365_v62 = vadd.f32 %v356_v56, %v333_v61 }
 0x1f9   :  { %v467_v4 = vpop.eup %466 }
 0x1fa   :  { %373 = vst.msk [vmem:[%s777_s1 + $0x30] sm:$0xff] %vm26_vm0, %v365_v62  ;;  %v358_v10 = vmul.f32 0.6931472, %v467_v4 }
 0x1fc   :  { %v366_v8 = vadd.f32 %v358_v10, %v334_v60 }
 0x1fe   :  { %374 = vst.msk [vmem:[%s777_s1 + $0x38] sm:$0xff] %vm26_vm0, %v366_v8 }
 0x1ff   :  { %379 = vsyncpa [#allocation5], 1 }

</bundles_post_ra>
